<compile_context>
chip_gen: v6e
topology: v6e:2x2x1
jax: 0.10.0
libtpu: 0.0.40
codegen_flags: <defaults>
</compile_context>

<pallas_src>
import functools

import jax
import jax.numpy as jnp
from jax import lax
from jax.experimental import pallas as pl
from jax.experimental.pallas import tpu as pltpu

MASK_VALUE = float(-jnp.finfo(jnp.float32).max)  # mask_value = -finfo(dtype).max


# ------------------------------------------------------------------ kernel --
def _fused_attention_kernel(x_ref, *refs, heads, dim_head, self_attend,
                            has_mem, compute_dtype):
    """One grid step == one batch element; all heads batched in one einsum."""
    refs = list(refs)
    if has_mem:
        mk_ref, mv_ref = refs[0], refs[1]
        refs = refs[2:]
    wq_ref = refs[0]
    refs = refs[1:]
    if self_attend:
        wk_ref, wv_ref = refs[0], refs[1]
        refs = refs[2:]
    wo_ref, bo_ref, o_ref = refs

    n = x_ref.shape[1]

    # ---- fused projections (bf16 MXU, f32 accumulation) --------------------
    x = x_ref[0].astype(compute_dtype)                        # (n, dim)
    xh = jnp.broadcast_to(x[None], (heads,) + x.shape)        # (h, n, dim) hoisted once

    # scale is already folded into wq_ref (done once, host-side).
    q = jnp.einsum('hnd,hdk->hnk', xh, wq_ref[...],
                   preferred_element_type=jnp.float32).astype(compute_dtype)

    sims = []   # f32 score blocks, shared softmax == softmax over concat([mem|self])
    vals = []   # matching bf16 value blocks
    if has_mem:
        mk = mk_ref[0]                                         # (h, m, dh) bf16
        mv = mv_ref[0]
        sims.append(jnp.einsum('hid,hjd->hij', q, mk,
                               preferred_element_type=jnp.float32))
        vals.append(mv)
    if self_attend:
        sk = jnp.einsum('hnd,hdk->hnk', xh, wk_ref[...],
                        preferred_element_type=jnp.float32).astype(compute_dtype)
        sv = jnp.einsum('hnd,hdk->hnk', xh, wv_ref[...],
                        preferred_element_type=jnp.float32).astype(compute_dtype)
        sim_self = jnp.einsum('hid,hjd->hij', q, sk,
                              preferred_element_type=jnp.float32)
        # Reference mask triu_(j - i + 1) on the concatenated [mem|self] scores
        # never touches the memory block and reduces to a strict upper-triangular
        # mask (col > row) on the self block.
        row = lax.broadcasted_iota(jnp.int32, (heads, n, n), 1)
        col = lax.broadcasted_iota(jnp.int32, (heads, n, n), 2)
        sim_self = jnp.where(col > row, MASK_VALUE, sim_self)
        sims.append(sim_self)
        vals.append(sv)

    # ---- joint numerically-stable softmax over [mem | self] (fp32) ---------
    m_row = functools.reduce(
        jnp.maximum, [s.max(axis=-1, keepdims=True) for s in sims])
    es = [jnp.exp(s - m_row) for s in sims]
    denom = sum(e.sum(axis=-1, keepdims=True) for e in es)    # (h, n, 1)

    acc = None                                                 # (h, n, dh) f32
    for e, v in zip(es, vals):
        pv = jnp.einsum('hij,hjd->hid', e.astype(compute_dtype), v,
                        preferred_element_type=jnp.float32)
        acc = pv if acc is None else acc + pv

    # EUP reciprocal instead of a VPU divide.
    out_h = (acc * pl.reciprocal(denom, approx=True)).astype(compute_dtype)

    # ---- fused to_out: y = sum_h out_h[h] @ w_out[h] + b_out ---------------
    yh = jnp.einsum('hnd,hdo->hno', out_h, wo_ref[...],
                    preferred_element_type=jnp.float32)        # (h, n, dim)
    y = jnp.sum(yh, axis=0) + bo_ref[...]                      # (n, dim) f32
    o_ref[0] = y.astype(o_ref.dtype)


# ----------------------------------------------------------- param prepare --
def prepare_params(params, *, heads, dim_head, compute_dtype=jnp.bfloat16):
    """One-time (outside jit) constant folding + head-major relayout of weights.

    Input params use the x @ W convention (already transposed vs torch):
      w_q: (dim, inner), w_kv: (dim, 2*inner), w_out: (inner, dim), b_out: (dim,)
    """
    dim, inner = params["w_q"].shape
    assert inner == heads * dim_head
    scale = dim_head ** (-0.5)

    def head_major(w):  # (dim, inner) -> (heads, dim, dim_head)
        return jnp.transpose(w.reshape(dim, heads, dim_head), (1, 0, 2))

    w_kv = params["w_kv"]
    return {
        "w_q_h": head_major(params["w_q"] * scale).astype(compute_dtype),
        "w_k_h": head_major(w_kv[:, :inner]).astype(compute_dtype),
        "w_v_h": head_major(w_kv[:, inner:]).astype(compute_dtype),
        # (inner, dim) -> (heads, dim_head, dim); inner index is h*dim_head + d.
        "w_out_h": params["w_out"].reshape(heads, dim_head, dim).astype(compute_dtype),
        "b_out": params["b_out"].reshape(1, dim).astype(jnp.float32),
    }


# ----------------------------------------------------------------- forward --
def attention_forward(x, memory, prepped, *, heads, dim_head,
                      compute_dtype=jnp.bfloat16):
    """Reproduces Attention.forward(x, memory, pos_emb=None), dropout=0.0."""
    b, n, dim = x.shape
    self_attend = n > 1                      # exactly as the reference module
    mem_k, mem_v = memory if memory is not None else (None, None)
    has_mem = mem_k is not None
    if not has_mem and not self_attend:
        raise ValueError("memory must be provided when seq_len == 1 (no self K/V).")

    in_arrays = [x]
    in_specs = [pl.BlockSpec((1, n, dim), lambda bi: (bi, 0, 0))]

    if has_mem:
        m = mem_k.shape[1]

        def to_head_major(t):  # (b, m, h*d) -> (b, h, m, d), bf16 (layout plumbing)
            return jnp.transpose(
                t.reshape(b, m, heads, dim_head), (0, 2, 1, 3)).astype(compute_dtype)

        in_arrays += [to_head_major(mem_k), to_head_major(mem_v)]
        in_specs += [pl.BlockSpec((1, heads, m, dim_head),
                                  lambda bi: (bi, 0, 0, 0))] * 2

    in_arrays.append(prepped["w_q_h"])
    in_specs.append(pl.BlockSpec((heads, dim, dim_head), lambda bi: (0, 0, 0)))
    if self_attend:
        in_arrays += [prepped["w_k_h"], prepped["w_v_h"]]
        in_specs += [pl.BlockSpec((heads, dim, dim_head), lambda bi: (0, 0, 0))] * 2
    in_arrays += [prepped["w_out_h"], prepped["b_out"]]
    in_specs += [pl.BlockSpec((heads, dim_head, dim), lambda bi: (0, 0, 0)),
                 pl.BlockSpec((1, dim), lambda bi: (0, 0))]

    kernel = functools.partial(
        _fused_attention_kernel, heads=heads, dim_head=dim_head,
        self_attend=self_attend, has_mem=has_mem, compute_dtype=compute_dtype)

    # TODO(synk): for long sequences/memories add a flash-style kv-tile grid
    # axis ("arbitrary") with m/l/acc VMEM scratch so whole-sequence score
    # blocks never have to fit v7x's 64 MiB VMEM, and a second "parallel"
    # q-tile / head-group axis to keep both v7x TensorCores busy when b == 1.
    return pl.pallas_call(
        kernel,
        out_shape=jax.ShapeDtypeStruct((b, n, dim), x.dtype),
        grid=(b,),
        in_specs=in_specs,
        out_specs=pl.BlockSpec((1, n, dim), lambda bi: (bi, 0, 0)),
        compiler_params=pltpu.CompilerParams(
            dimension_semantics=("parallel",),
            vmem_limit_bytes=32 * 1024 * 1024),
    )(*in_arrays)


# -------------------------------------------------------- pure-JAX reference --
def reference_forward(x, memory, params, *, heads, dim_head):
    b, n, dim = x.shape
    inner = heads * dim_head
    scale = dim_head ** (-0.5)
    q = (x @ params["w_q"]) * scale
    k, v = memory if memory is not None else (None, None)
    if n > 1:
        kv = x @ params["w_kv"]
        sk, sv = kv[..., :inner], kv[..., inner:]
        k = sk if k is None else jnp.concatenate([k, sk], axis=1)
        v = sv if v is None else jnp.concatenate([v, sv], axis=1)

    def split(t):
        return jnp.transpose(t.reshape(b, -1, heads, dim_head), (0, 2, 1, 3))

    q, k, v = split(q), split(k), split(v)
    sim = jnp.einsum('bhid,bhjd->bhij', q, k)
    i, j = sim.shape[-2:]
    if n > 1:
        mask = jnp.triu(jnp.ones((i, j), bool), j - i + 1)
        sim = jnp.where(mask[None, None], MASK_VALUE, sim)
    attn = jax.nn.softmax(sim, axis=-1)
    out = jnp.einsum('bhij,bhjd->bhid', attn, v)
    out = jnp.transpose(out, (0, 2, 1, 3)).reshape(b, n, inner)
    return out @ params["w_out"] + params["b_out"]


# -------------------------------------------------------------------- main --
if __name__ == "__main__":
    b, n, m = 2, 8, 8
    dim, heads, dim_head = 32, 4, 32
    inner_dim = heads * dim_head  # 128

    key = jax.random.PRNGKey(0)
    k1, k2, k3, k4, k5, k6, k7 = jax.random.split(key, 7)

    x = jax.random.normal(k1, (b, n, dim), jnp.float32)
    mem_k = jax.random.normal(k2, (b, m, inner_dim), jnp.float32)
    mem_v = jax.random.normal(k3, (b, m, inner_dim), jnp.float32)

    # Torch stores Linear weight as (out, in); here we keep the transposed
    # (in, out) matrices used directly by x @ W.
    params = {
        "w_q": 0.05 * jax.random.normal(k4, (dim, inner_dim), jnp.float32),
        "w_kv": 0.05 * jax.random.normal(k5, (dim, 2 * inner_dim), jnp.float32),
        "w_out": 0.05 * jax.random.normal(k6, (inner_dim, dim), jnp.float32),
        "b_out": 0.05 * jax.random.normal(k7, (dim,), jnp.float32),
    }

    # TODO(synk): pos_emb callable argument has no concrete definition in the
    # reference module; it is left unsupported (None). dropout=0.0 is identity.

    prepped = prepare_params(params, heads=heads, dim_head=dim_head)

    fwd = jax.jit(
        functools.partial(attention_forward, heads=heads, dim_head=dim_head))
    out = fwd(x, (mem_k, mem_v), prepped)
    jax.block_until_ready(out)
    assert out.shape == (b, n, dim)

    ref = reference_forward(x, (mem_k, mem_v), params, heads=heads,
                            dim_head=dim_head)
    # bf16 matmul operands + approx reciprocal -> bf16-appropriate tolerance.
    assert jnp.allclose(out, ref, atol=5e-2, rtol=5e-2), (
        float(jnp.max(jnp.abs(out - ref))))
    print("KERNEL_OK")
</pallas_src>

<mosaic_0001>
module attributes {stable_mosaic.version = 11 : i64} {
  func.func @_fused_attention_kernel(%arg0: i32, %arg1: memref<1x8x32xf32, #tpu.memory_space<vmem>>, %arg2: memref<1x4x8x32xbf16, #tpu.memory_space<vmem>>, %arg3: memref<1x4x8x32xbf16, #tpu.memory_space<vmem>>, %arg4: memref<4x32x32xbf16, #tpu.memory_space<vmem>>, %arg5: memref<4x32x32xbf16, #tpu.memory_space<vmem>>, %arg6: memref<4x32x32xbf16, #tpu.memory_space<vmem>>, %arg7: memref<4x32x32xbf16, #tpu.memory_space<vmem>>, %arg8: memref<1x32xf32, #tpu.memory_space<vmem>>, %arg9: memref<1x8x32xf32, #tpu.memory_space<vmem>>) attributes {dimension_semantics = [#tpu.dimension_semantics<parallel>], iteration_bounds = array<i64: 2>, scalar_prefetch = 0 : i64, scratch_operands = 0 : i64, tpu.core_type = #tpu.core_type<tc>, window_params = [{transform_indices = @transform_0, window_bounds = array<i64: 1, 8, 32>}, {transform_indices = @transform_1, window_bounds = array<i64: 1, 4, 8, 32>}, {transform_indices = @transform_2, window_bounds = array<i64: 1, 4, 8, 32>}, {pipeline_mode = #tpu.pipeline_mode<synchronous>, transform_indices = @transform_3, window_bounds = array<i64: 4, 32, 32>}, {pipeline_mode = #tpu.pipeline_mode<synchronous>, transform_indices = @transform_4, window_bounds = array<i64: 4, 32, 32>}, {pipeline_mode = #tpu.pipeline_mode<synchronous>, transform_indices = @transform_5, window_bounds = array<i64: 4, 32, 32>}, {pipeline_mode = #tpu.pipeline_mode<synchronous>, transform_indices = @transform_6, window_bounds = array<i64: 4, 32, 32>}, {pipeline_mode = #tpu.pipeline_mode<synchronous>, transform_indices = @transform_7, window_bounds = array<i64: 1, 32>}, {transform_indices = @transform_8, window_bounds = array<i64: 1, 8, 32>}]} {
    %c0 = arith.constant 0 : index
    %c0_0 = arith.constant 0 : index
    %c0_1 = arith.constant 0 : index
    %0 = vector.load %arg1[%c0, %c0_0, %c0_1] : memref<1x8x32xf32, #tpu.memory_space<vmem>>, vector<1x8x32xf32>
    %1 = vector.shape_cast %0 : vector<1x8x32xf32> to vector<8x32xf32>
    %2 = arith.truncf %1 : vector<8x32xf32> to vector<8x32xbf16>
    %3 = vector.shape_cast %2 : vector<8x32xbf16> to vector<1x8x32xbf16>
    %4 = vector.shape_cast %3 : vector<1x8x32xbf16> to vector<1x8x32xbf16>
    %5 = vector.broadcast %4 : vector<1x8x32xbf16> to vector<4x8x32xbf16>
    %c0_2 = arith.constant 0 : index
    %c0_3 = arith.constant 0 : index
    %c0_4 = arith.constant 0 : index
    %6 = vector.load %arg4[%c0_2, %c0_3, %c0_4] : memref<4x32x32xbf16, #tpu.memory_space<vmem>>, vector<4x32x32xbf16>
    "tpu.trace_start"() <{level = 10 : i32, message = "hnd,hdk->hnk"}> : () -> ()
    %cst = arith.constant dense<0.000000e+00> : vector<4x8x32xf32>
    %7 = tpu.matmul %5, %6, %cst {dimension_numbers = #tpu.dot_dimension_numbers<[2], [1], [1], [2], [0, 0, 0, 1, 1, 2], [0], [0]>} : vector<4x8x32xbf16>, vector<4x32x32xbf16>, vector<4x8x32xf32> -> vector<4x8x32xf32>
    "tpu.trace_stop"() : () -> ()
    %8 = arith.truncf %7 : vector<4x8x32xf32> to vector<4x8x32xbf16>
    %c0_5 = arith.constant 0 : index
    %c0_6 = arith.constant 0 : index
    %c0_7 = arith.constant 0 : index
    %c0_8 = arith.constant 0 : index
    %9 = vector.load %arg2[%c0_5, %c0_6, %c0_7, %c0_8] : memref<1x4x8x32xbf16, #tpu.memory_space<vmem>>, vector<1x4x8x32xbf16>
    %10 = vector.shape_cast %9 : vector<1x4x8x32xbf16> to vector<4x8x32xbf16>
    %c0_9 = arith.constant 0 : index
    %c0_10 = arith.constant 0 : index
    %c0_11 = arith.constant 0 : index
    %c0_12 = arith.constant 0 : index
    %11 = vector.load %arg3[%c0_9, %c0_10, %c0_11, %c0_12] : memref<1x4x8x32xbf16, #tpu.memory_space<vmem>>, vector<1x4x8x32xbf16>
    %12 = vector.shape_cast %11 : vector<1x4x8x32xbf16> to vector<4x8x32xbf16>
    "tpu.trace_start"() <{level = 10 : i32, message = "hid,hjd->hij"}> : () -> ()
    %cst_13 = arith.constant dense<0.000000e+00> : vector<4x8x8xf32>
    %13 = tpu.matmul %8, %10, %cst_13 {dimension_numbers = #tpu.dot_dimension_numbers<[2], [2], [1], [1], [0, 0, 0, 1, 1, 1], [0], [0]>} : vector<4x8x32xbf16>, vector<4x8x32xbf16>, vector<4x8x8xf32> -> vector<4x8x8xf32>
    "tpu.trace_stop"() : () -> ()
    %c0_14 = arith.constant 0 : index
    %c0_15 = arith.constant 0 : index
    %c0_16 = arith.constant 0 : index
    %14 = vector.load %arg5[%c0_14, %c0_15, %c0_16] : memref<4x32x32xbf16, #tpu.memory_space<vmem>>, vector<4x32x32xbf16>
    "tpu.trace_start"() <{level = 10 : i32, message = "hnd,hdk->hnk"}> : () -> ()
    %cst_17 = arith.constant dense<0.000000e+00> : vector<4x8x32xf32>
    %15 = tpu.matmul %5, %14, %cst_17 {dimension_numbers = #tpu.dot_dimension_numbers<[2], [1], [1], [2], [0, 0, 0, 1, 1, 2], [0], [0]>} : vector<4x8x32xbf16>, vector<4x32x32xbf16>, vector<4x8x32xf32> -> vector<4x8x32xf32>
    "tpu.trace_stop"() : () -> ()
    %16 = arith.truncf %15 : vector<4x8x32xf32> to vector<4x8x32xbf16>
    %c0_18 = arith.constant 0 : index
    %c0_19 = arith.constant 0 : index
    %c0_20 = arith.constant 0 : index
    %17 = vector.load %arg6[%c0_18, %c0_19, %c0_20] : memref<4x32x32xbf16, #tpu.memory_space<vmem>>, vector<4x32x32xbf16>
    "tpu.trace_start"() <{level = 10 : i32, message = "hnd,hdk->hnk"}> : () -> ()
    %cst_21 = arith.constant dense<0.000000e+00> : vector<4x8x32xf32>
    %18 = tpu.matmul %5, %17, %cst_21 {dimension_numbers = #tpu.dot_dimension_numbers<[2], [1], [1], [2], [0, 0, 0, 1, 1, 2], [0], [0]>} : vector<4x8x32xbf16>, vector<4x32x32xbf16>, vector<4x8x32xf32> -> vector<4x8x32xf32>
    "tpu.trace_stop"() : () -> ()
    %19 = arith.truncf %18 : vector<4x8x32xf32> to vector<4x8x32xbf16>
    "tpu.trace_start"() <{level = 10 : i32, message = "hid,hjd->hij"}> : () -> ()
    %cst_22 = arith.constant dense<0.000000e+00> : vector<4x8x8xf32>
    %20 = tpu.matmul %8, %16, %cst_22 {dimension_numbers = #tpu.dot_dimension_numbers<[2], [2], [1], [1], [0, 0, 0, 1, 1, 1], [0], [0]>} : vector<4x8x32xbf16>, vector<4x8x32xbf16>, vector<4x8x8xf32> -> vector<4x8x8xf32>
    "tpu.trace_stop"() : () -> ()
    %21 = tpu.iota {dimensions = array<i32: 1>} : vector<4x8x8xi32>
    %22 = tpu.iota {dimensions = array<i32: 2>} : vector<4x8x8xi32>
    %23 = arith.cmpi sgt, %22, %21 : vector<4x8x8xi32>
    %cst_23 = arith.constant -3.40282347E+38 : f32
    %24 = vector.broadcast %cst_23 : f32 to vector<4x8x8xf32>
    %25 = arith.select %23, %24, %20 : vector<4x8x8xi1>, vector<4x8x8xf32>
    %cst_24 = arith.constant dense<0xFF800000> : vector<4x8xf32>
    %26 = vector.multi_reduction <maximumf>, %13, %cst_24 [2] : vector<4x8x8xf32> to vector<4x8xf32>
    %27 = vector.shape_cast %26 : vector<4x8xf32> to vector<4x8x1xf32>
    %cst_25 = arith.constant dense<0xFF800000> : vector<4x8xf32>
    %28 = vector.multi_reduction <maximumf>, %25, %cst_25 [2] : vector<4x8x8xf32> to vector<4x8xf32>
    %29 = vector.shape_cast %28 : vector<4x8xf32> to vector<4x8x1xf32>
    %30 = arith.maximumf %27, %29 : vector<4x8x1xf32>
    %31 = vector.broadcast %30 : vector<4x8x1xf32> to vector<4x8x8xf32>
    %32 = arith.subf %13, %31 : vector<4x8x8xf32>
    %33 = math.exp %32 : vector<4x8x8xf32>
    %34 = vector.broadcast %30 : vector<4x8x1xf32> to vector<4x8x8xf32>
    %35 = arith.subf %25, %34 : vector<4x8x8xf32>
    %36 = math.exp %35 : vector<4x8x8xf32>
    %cst_26 = arith.constant dense<0.000000e+00> : vector<4x8xf32>
    %37 = vector.multi_reduction <add>, %33, %cst_26 [2] : vector<4x8x8xf32> to vector<4x8xf32>
    %38 = vector.shape_cast %37 : vector<4x8xf32> to vector<4x8x1xf32>
    %cst_27 = arith.constant 0.000000e+00 : f32
    %39 = vector.broadcast %cst_27 : f32 to vector<4x8x1xf32>
    %40 = arith.addf %39, %38 : vector<4x8x1xf32>
    %cst_28 = arith.constant dense<0.000000e+00> : vector<4x8xf32>
    %41 = vector.multi_reduction <add>, %36, %cst_28 [2] : vector<4x8x8xf32> to vector<4x8xf32>
    %42 = vector.shape_cast %41 : vector<4x8xf32> to vector<4x8x1xf32>
    %43 = arith.addf %40, %42 : vector<4x8x1xf32>
    %44 = arith.truncf %33 : vector<4x8x8xf32> to vector<4x8x8xbf16>
    "tpu.trace_start"() <{level = 10 : i32, message = "hij,hjd->hid"}> : () -> ()
    %cst_29 = arith.constant dense<0.000000e+00> : vector<4x8x32xf32>
    %45 = tpu.matmul %44, %12, %cst_29 {dimension_numbers = #tpu.dot_dimension_numbers<[2], [1], [1], [2], [0, 0, 0, 1, 1, 2], [0], [0]>} : vector<4x8x8xbf16>, vector<4x8x32xbf16>, vector<4x8x32xf32> -> vector<4x8x32xf32>
    "tpu.trace_stop"() : () -> ()
    %46 = arith.truncf %36 : vector<4x8x8xf32> to vector<4x8x8xbf16>
    "tpu.trace_start"() <{level = 10 : i32, message = "hij,hjd->hid"}> : () -> ()
    %cst_30 = arith.constant dense<0.000000e+00> : vector<4x8x32xf32>
    %47 = tpu.matmul %46, %19, %cst_30 {dimension_numbers = #tpu.dot_dimension_numbers<[2], [1], [1], [2], [0, 0, 0, 1, 1, 2], [0], [0]>} : vector<4x8x8xbf16>, vector<4x8x32xbf16>, vector<4x8x32xf32> -> vector<4x8x32xf32>
    "tpu.trace_stop"() : () -> ()
    %48 = arith.addf %45, %47 : vector<4x8x32xf32>
    %49 = tpu.reciprocal %43 {approx = true} : vector<4x8x1xf32> -> vector<4x8x1xf32>
    %50 = vector.broadcast %49 : vector<4x8x1xf32> to vector<4x8x32xf32>
    %51 = arith.mulf %48, %50 : vector<4x8x32xf32>
    %52 = arith.truncf %51 : vector<4x8x32xf32> to vector<4x8x32xbf16>
    %c0_31 = arith.constant 0 : index
    %c0_32 = arith.constant 0 : index
    %c0_33 = arith.constant 0 : index
    %53 = vector.load %arg7[%c0_31, %c0_32, %c0_33] : memref<4x32x32xbf16, #tpu.memory_space<vmem>>, vector<4x32x32xbf16>
    "tpu.trace_start"() <{level = 10 : i32, message = "hnd,hdo->hno"}> : () -> ()
    %cst_34 = arith.constant dense<0.000000e+00> : vector<4x8x32xf32>
    %54 = tpu.matmul %52, %53, %cst_34 {dimension_numbers = #tpu.dot_dimension_numbers<[2], [1], [1], [2], [0, 0, 0, 1, 1, 2], [0], [0]>} : vector<4x8x32xbf16>, vector<4x32x32xbf16>, vector<4x8x32xf32> -> vector<4x8x32xf32>
    "tpu.trace_stop"() : () -> ()
    %cst_35 = arith.constant dense<0.000000e+00> : vector<8x32xf32>
    %55 = vector.multi_reduction <add>, %54, %cst_35 [0] : vector<4x8x32xf32> to vector<8x32xf32>
    %c0_36 = arith.constant 0 : index
    %c0_37 = arith.constant 0 : index
    %56 = vector.load %arg8[%c0_36, %c0_37] : memref<1x32xf32, #tpu.memory_space<vmem>>, vector<1x32xf32>
    %57 = vector.broadcast %56 : vector<1x32xf32> to vector<8x32xf32>
    %58 = arith.addf %55, %57 : vector<8x32xf32>
    %c0_38 = arith.constant 0 : index
    %c0_39 = arith.constant 0 : index
    %c0_40 = arith.constant 0 : index
    %59 = vector.load %arg9[%c0_38, %c0_39, %c0_40] : memref<1x8x32xf32, #tpu.memory_space<vmem>>, vector<1x8x32xf32>
    %60 = vector.shape_cast %59 : vector<1x8x32xf32> to vector<8x32xf32>
    %61 = vector.shape_cast %58 : vector<8x32xf32> to vector<1x8x32xf32>
    tpu.vector_store %arg9[%c0_38, %c0_39, %c0_40], %61 {strides = array<i32>} : memref<1x8x32xf32, #tpu.memory_space<vmem>>, vector<1x8x32xf32>,
    return
  }
  func.func @transform_0(%arg0: i32) -> (i32, i32, i32) {
    %c0_i32 = arith.constant 0 : i32
    %c0_i32_0 = arith.constant 0 : i32
    %c0_i32_1 = arith.constant 0 : i32
    return %arg0, %c0_i32, %c0_i32_0 : i32, i32, i32
  }
  func.func @transform_1(%arg0: i32) -> (i32, i32, i32, i32) {
    %c0_i32 = arith.constant 0 : i32
    %c0_i32_0 = arith.constant 0 : i32
    %c0_i32_1 = arith.constant 0 : i32
    %c0_i32_2 = arith.constant 0 : i32
    return %arg0, %c0_i32, %c0_i32_0, %c0_i32_1 : i32, i32, i32, i32
  }
  func.func @transform_2(%arg0: i32) -> (i32, i32, i32, i32) {
    %c0_i32 = arith.constant 0 : i32
    %c0_i32_0 = arith.constant 0 : i32
    %c0_i32_1 = arith.constant 0 : i32
    %c0_i32_2 = arith.constant 0 : i32
    return %arg0, %c0_i32, %c0_i32_0, %c0_i32_1 : i32, i32, i32, i32
  }
  func.func @transform_3(%arg0: i32) -> (i32, i32, i32) {
    %c0_i32 = arith.constant 0 : i32
    %c0_i32_0 = arith.constant 0 : i32
    %c0_i32_1 = arith.constant 0 : i32
    %c0_i32_2 = arith.constant 0 : i32
    return %c0_i32, %c0_i32_0, %c0_i32_1 : i32, i32, i32
  }
  func.func @transform_4(%arg0: i32) -> (i32, i32, i32) {
    %c0_i32 = arith.constant 0 : i32
    %c0_i32_0 = arith.constant 0 : i32
    %c0_i32_1 = arith.constant 0 : i32
    %c0_i32_2 = arith.constant 0 : i32
    return %c0_i32, %c0_i32_0, %c0_i32_1 : i32, i32, i32
  }
  func.func @transform_5(%arg0: i32) -> (i32, i32, i32) {
    %c0_i32 = arith.constant 0 : i32
    %c0_i32_0 = arith.constant 0 : i32
    %c0_i32_1 = arith.constant 0 : i32
    %c0_i32_2 = arith.constant 0 : i32
    return %c0_i32, %c0_i32_0, %c0_i32_1 : i32, i32, i32
  }
  func.func @transform_6(%arg0: i32) -> (i32, i32, i32) {
    %c0_i32 = arith.constant 0 : i32
    %c0_i32_0 = arith.constant 0 : i32
    %c0_i32_1 = arith.constant 0 : i32
    %c0_i32_2 = arith.constant 0 : i32
    return %c0_i32, %c0_i32_0, %c0_i32_1 : i32, i32, i32
  }
  func.func @transform_7(%arg0: i32) -> (i32, i32) {
    %c0_i32 = arith.constant 0 : i32
    %c0_i32_0 = arith.constant 0 : i32
    %c0_i32_1 = arith.constant 0 : i32
    return %c0_i32, %c0_i32_0 : i32, i32
  }
  func.func @transform_8(%arg0: i32) -> (i32, i32, i32) {
    %c0_i32 = arith.constant 0 : i32
    %c0_i32_0 = arith.constant 0 : i32
    %c0_i32_1 = arith.constant 0 : i32
    return %arg0, %c0_i32, %c0_i32_0 : i32, i32, i32
  }
}

</mosaic_0001>

<bundles_post_ra>
// kernel: attention_forward.1
= control target key start
LH: loop header
LB: loop body
LE: loop exit
PB: predicated region body
PF: predicated region fallthrough
CT: control target
= control target key end

     0   :  { %13 = vsyncpa [#allocation3], 0  ;;  %s3409_s0 = inlined_call_operand.hbm [shape: f32[2,8,32], index: 0, kind: input, shape index: {}]   ;;  %s3410_s1 = inlined_call_operand.vmem [shape: bf16[2,4,8,32], index: 1, kind: input, shape index: {}]   ;;  %s3411_s2 = inlined_call_operand.vmem [shape: bf16[2,4,8,32], index: 2, kind: input, shape index: {}]   ;;  %s3412_s3 = inlined_call_operand.vmem [shape: bf16[4,32,32], index: 3, kind: input, shape index: {}]   ;;  %s3413_s4 = inlined_call_operand.vmem [shape: bf16[4,32,32], index: 4, kind: input, shape index: {}]   ;;  %s3414_s5 = inlined_call_operand.vmem [shape: bf16[4,32,32], index: 5, kind: input, shape index: {}]   ;;  %s3415_s6 = inlined_call_operand.vmem [shape: bf16[4,32,32], index: 6, kind: input, shape index: {}]   ;;  %s3416_s7 = inlined_call_operand.vmem [shape: f32[1,32], index: 7, kind: input, shape index: {}]   ;;  %s3417_s8 = inlined_call_operand.hbm [shape: f32[2,8,32], index: 8, kind: output, shape index: {}]  }
   0x1   :  { %15 = vsyncpa [#allocation3 + $0x1], 0 }
   0x2   :  { %16 = vsyncpa [#allocation4], 0 }
   0x3   :  { %18 = vsyncpa [#allocation4 + $0x1], 0  ;;  %s2893_s27 = smov 0   ;;  %s2895_s28 = smov 0  }
   0x4   :  { %s2897_s29 = smov 0   ;;  %s2899_s30 = smov 0  }
   0x5 LB: > { %s2914_s9 = sadd.s32 4294967295, %s2842_s30   ;;  %s2259_s10 = sadd.s32 4294967294, %s2842_s30   ;;  %s2842_s30 = sphi %s2899_s30, %s3436_s30   ;;  %s2838_s29 = sphi %s2897_s29, %s3435_s29   ;;  %s2834_s28 = sphi %s2895_s28, %s3434_s28   ;;  %s2830_s27 = sphi %s2893_s27, %s3433_s27  }
   0x6   : > { %s2918_s11 = sadd.s32 1, %s2842_s30   ;;  %s31_s12 = sadd.s32 1, %s2838_s29 }
   0x7   : > { %s28_s13 = ssub.s32 %s2842_s30, %s2918_s11  ;;  %p38_p0 = scmp.ne.s32.totalorder %s2838_s29, %s2834_s28 }
   0x8   : > { %p29_p1 = scmp.eq.s32.totalorder %s28_s13, 0  ;;  %p39_p2 = scmp.eq.s32.totalorder %s2842_s30, 0 }
   0x9   : > { %p44_p3 = scmp.ne.s32.totalorder %s2834_s28, %s2830_s27  ;;  %p45_p4 = scmp.eq.s32.totalorder %s2914_s9, 0 }
   0xa   : > { %s2930_s14 = scalar_select %p29_p1, %s2838_s29, %s31_s12  }
   0xb   : > { %p2932_p5 = por %p39_p2, %p38_p0  ;;  %p2936_p6 = por %p45_p4, %p44_p3 }
   0xc   : > { %3420 = sst [smem:[#allocation8_spill]] %s2930_s14  ;;  %p225_p7 = scmp.eq.s32.totalorder %s2914_s9, 1 }
   0xd   : > { %s3422_s16 = scalar_select %p2936_p6, 1, 0 }
   0xe   : > { %p231_p8 = scmp.eq.s32.totalorder %s2259_s10, 1  ;;  %p2658_p10 = scmp.lt.s32.totalorder %s2842_s30, 2 }
   0xf   : > { %p2943_p11 = por %p225_p7, %p38_p0  ;;  %s266_s19 = sand.u32 1, %s2838_s29  }
  0x10   : > { %p2947_p12 = por %p231_p8, %p44_p3  ;;  %s2263_s20 = sshll.u32 %s2842_s30, 7 }
  0x11   : > { %s3423_s17 = scalar_select %p2943_p11, 1, 0 }
  0x12   : > { %s3424_s18 = scalar_select %p2947_p12, 1, 0 }
  0x13   : > { %s2262_s21 = sshll.u32 %s266_s19, 3  ;;  %s2956_s24 = scalar_lea.hbm %s3409_s0, %s2263_s20 }
  0x14   : > { %s270_s25 = scalar_lea.vmem [#allocation2], %s2262_s21  ;;  %p2960_p13 = pnand %p2658_p10, %p2932_p5 }
  0x15   : > { %s277_s26 = sshll.u32 %s270_s25, 4  ;;  %s267_s12 = scalar_lea.sflag [#allocation3], %s266_s19  ;;  %s2964_s26 = int_to_ptr.vmem [resolvable:$true] %s277_s26 }
  0x16   : > { %s2750_s13 = scalar_lea.hbm %s2956_s24, 128  ;;  %p2752_p3 = pneg %p2960_p13 }
  0x17   : > { %p2751_p2 = scmp.ne.s32.totalorder %s2956_s24, %s2750_s13  ;;  %s2755_s15 = scalar_lea.hbm %s3409_s0, 256 }
  0x18   : > { %p2756_p5 = scmp.lt.s32.totalorder %s2956_s24, %s3409_s0  ;;  %p2757_p8 = scmp.lt.s32.totalorder %s2755_s15, %s2750_s13 }
  0x19   : > { %p2753_p4 = pnand %p2752_p3, %p2751_p2 }
  0x1a   : > { %p2758_p10 = por %p2757_p8, %p2756_p5 }
  0x1b   : > { %p2754_p7 = pneg %p2753_p4 }
  0x1d   : > { %p2759_p9 = pnand %p2758_p10, %p2754_p7 }
  0x1f   : > { %2762 = shalt.err (!%p2759_p9)
}
  0x20   : > { %s2763_s19 = scalar_lea.vmem %s2964_s26, 128  ;;  %s2844_s25 = smov [#allocation2]  }
  0x21   : > { %p2764_p0 = scmp.ne.s32.totalorder %s2964_s26, %s2763_s19  ;;  %s2768_s14 = sshll.u32 %s2844_s25, 4  ;;  %s2769_s14 = int_to_ptr.vmem [resolvable:$false] %s2768_s14 }
  0x22   : > { %s2770_s20 = scalar_lea.vmem %s2769_s14, 256  ;;  %p2771_p4 = scmp.lt.s32.totalorder %s2964_s26, %s2769_s14 }
  0x23   : > { %p2766_p1 = pnand %p2764_p0, %p2752_p3  ;;  %p2772_p12 = scmp.lt.s32.totalorder %s2770_s20, %s2763_s19 }
  0x25   : > { %p2767_p2 = pneg %p2766_p1  ;;  %p2773_p11 = por %p2772_p12, %p2771_p4 }
  0x27   : > { %p2774_p6 = pnand %p2773_p11, %p2767_p2 }
  0x29   : > { %2777 = shalt.err (!%p2774_p6)
}
  0x2a   : > { %2653 = dma.hbm_to_vmem [thread:$0]  (!%p2960_p13), %s2956_s24, 128, %s2964_s26, %s267_s12  }
  0x2b   : > { %p3426_p9 = scmp.lt.s32.totalorder %s2842_s30, 3  ;;  %p3427_p7 = scmp.ge.s32.totalorder %s2842_s30, 1 }
  0x2d   : > { %p299_p0 = pnand %p3427_p7, %p3426_p9 }
  0x2e   : > { %s2991_s13 = sand.u32 (!%p299_p0), 1, %s2834_s28   ;;  %p3428_p6 = scmp.ne.s32.totalorder (!%p299_p0), %s3422_s16, 0 }
  0x2f   : > { %302 = sbr.rel (%p299_p0) target bundleno = 1271 (0x4f7), region = 52  ;;  %s2265_s14 = sshll.u32 (!%p299_p0), %s2991_s13, 3 }
  0x30   : > { %s305_s21 = scalar_lea.sflag (!%p299_p0), [#allocation3], %s2991_s13  ;;  %s308_s10 = scalar_lea.vmem (!%p299_p0), [#allocation2], %s2265_s14 }
  0x34   : > { %2821 = dma.done.wait (%p3428_p6), %s305_s21, 128  }
  0x35   : > { %2823 = vsyncadd (%p3428_p6), %s305_s21, 4294967168  ;;  %v2845_v0 = vmov 0.0   ;;  %p351_p11 = scmp.lt.s32.totalorder %s2914_s9, 1  ;;  %vm2846_vm0 = vmmov 0   ;;  %v2694_v1 = vld [vmem:[%s3412_s3 + $0x8] sm:$0xff]   ;;  %v2695_v2 = vld [vmem:[%s3412_s3 + $0x18] sm:$0xff]  }
  0x36   : > { %2422 = vmatprep.subr.bf16.mxu0 %v2845_v0  ;;  %2430 = vmatprep.subr.bf16.mxu1 %v2845_v0  ;;  %v2696_v3 = vld [vmem:[%s3412_s3] sm:$0xff]   ;;  %v2697_v4 = vld [vmem:[%s3412_s3 + $0x10] sm:$0xff]   ;;  %vm392_vm1 = vcmask 261120   ;;  %v2698_v7 = vld [vmem:[%s3412_s3 + $0x28] sm:$0xff]   ;;  %vm1425_vm2 = vcmask 64512   ;;  %vm1521_vm3 = vcmask 1043456  }
  0x37   : > { %2426 = vmatprep.mubr.msk.bf16.mxu0 %vm2846_vm0, %v2845_v0  ;;  %2434 = vmatprep.mubr.msk.bf16.mxu1 %vm2846_vm0, %v2845_v0  ;;  %s3009_s24 = scalar_select %p351_p11, %s2914_s9, 1  ;;  %v362_v5 = vld [vmem:[%s308_s10] sm:$0xff]  ;;  %v2699_v8 = vld [vmem:[%s3412_s3 + $0x38] sm:$0xff]   ;;  %v2701_v12 = vld [vmem:[%s3412_s3 + $0x30] sm:$0xff]  }
  0x38   : > { %2423 = vmatpush3.bf16.msra.mxu0 %v2694_v1  ;;  %2431 = vmatpush3.bf16.msra.mxu1 %v2695_v2  ;;  %v3026_v6 = vpack.c.bf16 %v362_v5, %v362_v5  ;;  %v2700_v9 = vld [vmem:[%s3412_s3 + $0x20] sm:$0xff]   ;;  %v2702_v30 = vld [vmem:[%s3413_s4 + $0x8] sm:$0xff]   ;;  %v2703_v33 = vld [vmem:[%s3413_s4 + $0x18] sm:$0xff]   ;;  %s2337_s21 = sshll.u32 %s2914_s9, 7  ;;  %s350_s26 = scalar_lea.vmem [#allocation5], %s2265_s14 }
  0x39   : > { %s2340_s19 = sshll.u32 %s3009_s24, 4  ;;  %2424 = vmatprep.subr.bf16.mxu0 %v2845_v0  ;;  %2432 = vmatprep.subr.bf16.mxu1 %v2845_v0  ;;  %v2704_v38 = vld [vmem:[%s3413_s4] sm:$0xff]   ;;  %v2705_v40 = vld [vmem:[%s3413_s4 + $0x10] sm:$0xff]   ;;  %v2706_v43 = vld [vmem:[%s3413_s4 + $0x28] sm:$0xff]   ;;  %s2152_s9 = scalar_lea.sflag [#allocation4], %s2991_s13 }
  0x3a   : > { %s3033_s16 = scalar_lea.vmem %s3410_s1, %s2340_s19  ;;  %v2707_v44 = vld [vmem:[%s3413_s4 + $0x38] sm:$0xff]   ;;  %v2708_v45 = vld [vmem:[%s3413_s4 + $0x20] sm:$0xff]   ;;  %v2709_v46 = vld [vmem:[%s3413_s4 + $0x30] sm:$0xff]   ;;  %s3277_s10 = scalar_lea.vmem %s3411_s2, %s2340_s19 }
  0x3b   : > { %v596_v10 = vld [vmem:[%s3033_s16] sm:$0xf]  ;;  %v597_v11 = vld [vmem:[%s3033_s16 + $0x4] sm:$0xf]  ;;  %v598_v15 = vld [vmem:[%s3033_s16 + $0x8] sm:$0xf] }
  0x3c   : > { %2425 = vmatpush3.bf16.msra.mxu0 %v2696_v3  ;;  %2433 = vmatpush3.bf16.msra.mxu1 %v2697_v4  ;;  %v608_v13 = vsel %vm392_vm1, %v596_v10, 0  ;;  %v654_v14 = vsel %vm392_vm1, %v597_v11, 0  ;;  %v599_v16 = vld [vmem:[%s3033_s16 + $0xc] sm:$0xf]  ;;  %v700_v20 = vsel %vm392_vm1, %v598_v15, 0  ;;  %v2711_v48 = vld [vmem:[%s3414_s5] sm:$0xff]  }
  0x3d   : > { %2438 = vmatprep.subr.bf16.mxu0 %v2845_v0  ;;  %2446 = vmatprep.subr.bf16.mxu1 %v2845_v0  ;;  %v746_v23 = vsel %vm392_vm1, %v599_v16, 0  ;;  %v2710_v47 = vld [vmem:[%s3414_s5 + $0x8] sm:$0xff]   ;;  %v2712_v49 = vld [vmem:[%s3414_s5 + $0x18] sm:$0xff]   ;;  %v2713_v50 = vld [vmem:[%s3414_s5 + $0x10] sm:$0xff]   ;;  %s2165_s16 = sshll.u32 %s350_s26, 4  ;;  %p3429_p13 = scmp.ne.s32.totalorder %s3423_s17, 0  ;;  %s2166_s16 = int_to_ptr.vmem [resolvable:$true] %s2165_s16 }
  0x3e   : > { %v2714_v51 = vld [vmem:[%s3414_s5 + $0x28] sm:$0xff]   ;;  %v2715_v52 = vld [vmem:[%s3414_s5 + $0x20] sm:$0xff]   ;;  %v2716_v53 = vld [vmem:[%s3414_s5 + $0x38] sm:$0xff]   ;;  %s2778_s24 = scalar_lea.vmem %s2166_s16, 128  ;;  %s2847_s14 = smov [#allocation5]  }
  0x3f   : > { %2427 = vmatmul.mubr.msk.bf16.vlgmr.msra.gmra.mxu0 %vm392_vm1, %v3026_v6  ;;  %2435 = vmatmul.mubr.msk.bf16.vlgmr.msra.gmra.mxu1 %vm392_vm1, %v3026_v6  ;;  %v2717_v54 = vld [vmem:[%s3414_s5 + $0x30] sm:$0xff]   ;;  %p2779_p12 = scmp.ne.s32.totalorder %s2166_s16, %s2778_s24  ;;  %s2782_s19 = sshll.u32 %s2847_s14, 4  ;;  %s2783_s19 = int_to_ptr.vmem [resolvable:$false] %s2782_s19 }
  0x40   : > { %2439 = vmatpush3.bf16.msra.mxu0 %v2698_v7  ;;  %2447 = vmatpush3.bf16.msra.mxu1 %v2699_v8  ;;  %s2784_s22 = scalar_lea.vmem %s2783_s19, 256  ;;  %p2785_p5 = scmp.lt.s32.totalorder %s2166_s16, %s2783_s19 }
  0x41   : > { %2440 = vmatprep.subr.bf16.mxu0 %v2845_v0  ;;  %2448 = vmatprep.subr.bf16.mxu1 %v2845_v0  ;;  %p2780_p1 = pnand %p2779_p12, %p3429_p13  ;;  %p2786_p8 = scmp.lt.s32.totalorder %s2784_s22, %s2778_s24 }
  0x42   : > { %2442 = vmatprep.mubr.msk.bf16.mxu0 %vm2846_vm0, %v2845_v0  ;;  %2450 = vmatprep.mubr.msk.bf16.mxu1 %vm2846_vm0, %v2845_v0 }
  0x43   : > { %p2781_p3 = pneg %p2780_p1  ;;  %p2787_p10 = por %p2786_p8, %p2785_p5 }
  0x44   : > { %2441 = vmatpush3.bf16.msra.mxu0 %v2700_v9  ;;  %2449 = vmatpush3.bf16.msra.mxu1 %v2701_v12 }
  0x45   : > { %2454 = vmatprep.subr.bf16.mxu0 %v2845_v0  ;;  %2460 = vmatprep.subr.bf16.mxu1 %v2845_v0  ;;  %p2788_p2 = pnand %p2787_p10, %p2781_p3 }
  0x47   : > { %2443 = vmatmul.mubr.msk.bf16.vlgmr.msra.gmra.mxu0 %vm392_vm1, %v3026_v6  ;;  %2451 = vmatmul.mubr.msk.bf16.vlgmr.msra.gmra.mxu1 %vm392_vm1, %v3026_v6 }
  0x48   : > { %2455 = vmatpush3.bf16.xpose.msra.mxu0 %v608_v13  ;;  %2461 = vmatpush3.bf16.xpose.msra.mxu1 %v654_v14 }
  0x49   : > { %2456 = vmatprep.mubr.msk.bf16.mxu0 %vm2846_vm0, %v2845_v0  ;;  %2462 = vmatprep.mubr.msk.bf16.mxu1 %vm2846_vm0, %v2845_v0 }
  0x4a   : > { %2466 = vmatprep.subr.bf16.mxu0 %v2845_v0  ;;  %2472 = vmatprep.subr.bf16.mxu1 %v2845_v0 }
  0xff   : > { %v430_v17 = vpop.f32.mrf.mxu0  ;;  %v482_v19 = vpop.f32.mrf.mxu1 }
 0x100   : > { %v3077_v18 = vpack.c.bf16 %v430_v17, %v430_v17  ;;  %v3080_v21 = vpack.c.bf16 %v482_v19, %v482_v19 }
 0x101   : > { %v2428_v22 = vpop.f32.mrf.mxu0  ;;  %v2436_v24 = vpop.f32.mrf.mxu1 }
 0x102   : > { %2457 = vmatmul.mubr.msk.bf16.vlgmr.msra.gmra.mxu0 %vm392_vm1, %v3077_v18  ;;  %2463 = vmatmul.mubr.msk.bf16.vlgmr.msra.gmra.mxu1 %vm392_vm1, %v3080_v21 }
 0x103   : > { %v433_v25 = vpop.f32.mrf.mxu0  ;;  %2467 = vmatpush3.bf16.xpose.msra.mxu0 %v700_v20  ;;  %v485_v26 = vpop.f32.mrf.mxu1  ;;  %2473 = vmatpush3.bf16.xpose.msra.mxu1 %v746_v23 }
 0x104   : > { %2468 = vmatprep.mubr.msk.bf16.mxu0 %vm2846_vm0, %v2845_v0  ;;  %2474 = vmatprep.mubr.msk.bf16.mxu1 %vm2846_vm0, %v2845_v0 }
 0x105   : > { %v2429_v27 = vpop.f32.mrf.mxu0  ;;  %2478 = vmatprep.subr.bf16.mxu0 %v2845_v0  ;;  %v2437_v28 = vpop.f32.mrf.mxu1  ;;  %2486 = vmatprep.subr.bf16.mxu1 %v2845_v0 }
 0x107   : > { %v534_v29 = vpop.f32.mrf.mxu0  ;;  %v586_v32 = vpop.f32.mrf.mxu1 }
 0x108   : > { %v3096_v31 = vpack.c.bf16 %v534_v29, %v534_v29  ;;  %v3101_v34 = vpack.c.bf16 %v586_v32, %v586_v32 }
 0x109   : > { %v2444_v35 = vpop.f32.mrf.mxu0  ;;  %v2452_v36 = vpop.f32.mrf.mxu1 }
 0x10a   : > { %2469 = vmatmul.mubr.msk.bf16.vlgmr.msra.gmra.mxu0 %vm392_vm1, %v3096_v31  ;;  %2475 = vmatmul.mubr.msk.bf16.vlgmr.msra.gmra.mxu1 %vm392_vm1, %v3101_v34 }
 0x10b   : > { %v537_v37 = vpop.f32.mrf.mxu0  ;;  %2479 = vmatpush3.bf16.msra.mxu0 %v2702_v30  ;;  %v589_v39 = vpop.f32.mrf.mxu1  ;;  %2487 = vmatpush3.bf16.msra.mxu1 %v2703_v33 }
 0x10c   : > { %2480 = vmatprep.subr.bf16.mxu0 %v2845_v0  ;;  %2488 = vmatprep.subr.bf16.mxu1 %v2845_v0 }
 0x10d   : > { %v2445_v41 = vpop.f32.mrf.mxu0  ;;  %2482 = vmatprep.mubr.msk.bf16.mxu0 %vm2846_vm0, %v2845_v0  ;;  %v2453_v42 = vpop.f32.mrf.mxu1  ;;  %2490 = vmatprep.mubr.msk.bf16.mxu1 %vm2846_vm0, %v2845_v0 }
 0x10f   : > { %2481 = vmatpush3.bf16.msra.mxu0 %v2704_v38  ;;  %2489 = vmatpush3.bf16.msra.mxu1 %v2705_v40 }
 0x110   : > { %2494 = vmatprep.subr.bf16.mxu0 %v2845_v0  ;;  %2502 = vmatprep.subr.bf16.mxu1 %v2845_v0 }
 0x112   : > { %2483 = vmatmul.mubr.msk.bf16.vlgmr.msra.gmra.mxu0 %vm392_vm1, %v3026_v6  ;;  %2491 = vmatmul.mubr.msk.bf16.vlgmr.msra.gmra.mxu1 %vm392_vm1, %v3026_v6 }
 0x113   : > { %2495 = vmatpush3.bf16.msra.mxu0 %v2706_v43  ;;  %2503 = vmatpush3.bf16.msra.mxu1 %v2707_v44 }
 0x114   : > { %2496 = vmatprep.subr.bf16.mxu0 %v2845_v0  ;;  %2504 = vmatprep.subr.bf16.mxu1 %v2845_v0 }
 0x115   : > { %2498 = vmatprep.mubr.msk.bf16.mxu0 %vm2846_vm0, %v2845_v0  ;;  %2506 = vmatprep.mubr.msk.bf16.mxu1 %vm2846_vm0, %v2845_v0 }
 0x117   : > { %2497 = vmatpush3.bf16.msra.mxu0 %v2708_v45  ;;  %2505 = vmatpush3.bf16.msra.mxu1 %v2709_v46 }
 0x118   : > { %2510 = vmatprep.subr.bf16.mxu0 %v2845_v0  ;;  %2518 = vmatprep.subr.bf16.mxu1 %v2845_v0 }
 0x11a   : > { %2499 = vmatmul.mubr.msk.bf16.vlgmr.msra.gmra.mxu0 %vm392_vm1, %v3026_v6  ;;  %2507 = vmatmul.mubr.msk.bf16.vlgmr.msra.gmra.mxu1 %vm392_vm1, %v3026_v6 }
 0x11b   : > { %2511 = vmatpush3.bf16.msra.mxu0 %v2710_v47  ;;  %2514 = vmatprep.mubr.msk.bf16.mxu0 %vm2846_vm0, %v2845_v0 }
 0x11c   : > { %2512 = vmatprep.subr.bf16.mxu0 %v2845_v0  ;;  %2522 = vmatprep.mubr.msk.bf16.mxu1 %vm2846_vm0, %v2845_v0 }
 0x11d   : > { %2519 = vmatpush3.bf16.msra.mxu1 %v2712_v49 }
 0x11e   : > { %2520 = vmatprep.subr.bf16.mxu1 %v2845_v0 }
 0x11f   : > { %2513 = vmatpush3.bf16.msra.mxu0 %v2711_v48 }
 0x120   : > { %2526 = vmatprep.subr.bf16.mxu0 %v2845_v0 }
 0x121   : > { %2521 = vmatpush3.bf16.msra.mxu1 %v2713_v50 }
 0x122   : > { %2515 = vmatmul.mubr.msk.bf16.vlgmr.msra.gmra.mxu0 %vm392_vm1, %v3026_v6  ;;  %2534 = vmatprep.subr.bf16.mxu1 %v2845_v0 }
 0x123   : > { %2527 = vmatpush3.bf16.msra.mxu0 %v2714_v51  ;;  %2530 = vmatprep.mubr.msk.bf16.mxu0 %vm2846_vm0, %v2845_v0 }
 0x124   : > { %2528 = vmatprep.subr.bf16.mxu0 %v2845_v0  ;;  %2523 = vmatmul.mubr.msk.bf16.vlgmr.msra.gmra.mxu1 %vm392_vm1, %v3026_v6 }
 0x125   : > { %2535 = vmatpush3.bf16.msra.mxu1 %v2716_v53  ;;  %2538 = vmatprep.mubr.msk.bf16.mxu1 %vm2846_vm0, %v2845_v0 }
 0x126   : > { %2536 = vmatprep.subr.bf16.mxu1 %v2845_v0 }
 0x127   : > { %2529 = vmatpush3.bf16.msra.mxu0 %v2715_v52 }
 0x128   : > { %2542 = vmatprep.subr.bf16.mxu0 %v2845_v0 }
 0x129   : > { %2537 = vmatpush3.bf16.msra.mxu1 %v2717_v54  ;;  %v1416_v54 = vlaneseq }
 0x12a   : > { %2531 = vmatmul.mubr.msk.bf16.vlgmr.msra.gmra.mxu0 %vm392_vm1, %v3026_v6  ;;  %2548 = vmatprep.subr.bf16.mxu1 %v2845_v0 }
 0x12b   : > { %2544 = vmatprep.mubr.msk.bf16.mxu0 %vm2846_vm0, %v2845_v0 }
 0x12c   : > { %2539 = vmatmul.mubr.msk.bf16.vlgmr.msra.gmra.mxu1 %vm392_vm1, %v3026_v6 }
 0x12d   : > { %2550 = vmatprep.mubr.msk.bf16.mxu1 %vm2846_vm0, %v2845_v0 }
 0x1c2   : > { %v3201_v55 = vpop.f32.mrf.mxu0  ;;  %v3203_v56 = vpop.f32.mrf.mxu1 }
 0x1c3   : > { %v1426_v57 = vsel %vm1425_vm2, %v3201_v55, -inf  ;;  %v1429_v59 = vsel %vm1425_vm2, %v3203_v56, -inf }
 0x1c4   : > { %1427 = vmax.xlane.f32.xlu0 %v1426_v57  ;;  %v2458_v58 = vpop.f32.mrf.mxu0  ;;  %v2464_v60 = vpop.f32.mrf.mxu1  ;;  %1430 = vmax.xlane.f32.xlu1 %v1429_v59  ;;  %v1417_v57 = vshrl.u32 %v1416_v54, 7 }
 0x1c5   : > { %v1419_v58 = vand.u32 127, %v1416_v54 }
 0x1c6   : > { %v647_v61 = vpop.f32.mrf.mxu0  ;;  %v693_v62 = vpop.f32.mrf.mxu1 }
 0x1c7   : > { %vm1420_vm4 = vcmp.gt.s32.totalorder %v1419_v58, %v1417_v57 }
 0x1c8   : > { %v2459_v63 = vpop.f32.mrf.mxu0  ;;  %v2465_v1 = vpop.f32.mrf.mxu1 }
 0x1ca   : > { %v3209_v2 = vpop.f32.mrf.mxu0  ;;  %v3211_v3 = vpop.f32.mrf.mxu1 }
 0x1cc   : > { %v2470_v4 = vpop.f32.mrf.mxu0  ;;  %v2476_v5 = vpop.f32.mrf.mxu1 }
 0x1ce   : > { %v739_v6 = vpop.f32.mrf.mxu0  ;;  %v785_v7 = vpop.f32.mrf.mxu1 }
 0x1d0   : > { %v2471_v8 = vpop.f32.mrf.mxu0  ;;  %v2477_v9 = vpop.f32.mrf.mxu1 }
 0x1d1   : > { %v1432_v9 = vsel %vm1425_vm2, %v3209_v2, -inf }
 0x1d2   : > { %v850_v10 = vpop.f32.mrf.mxu0  ;;  %v902_v12 = vpop.f32.mrf.mxu1 }
 0x1d3   : > { %v1012_v11 = vpack.c.bf16 %v850_v10, %v850_v10  ;;  %v1013_v13 = vpack.c.bf16 %v902_v12, %v902_v12 }
 0x1d4   : > { %v2484_v14 = vpop.f32.mrf.mxu0  ;;  %v2492_v16 = vpop.f32.mrf.mxu1 }
 0x1d5   : > { %v1245_v15 = vsel %vm392_vm1, %v1012_v11, 0  ;;  %v1288_v17 = vsel %vm392_vm1, %v1013_v13, 0 }
 0x1d6   : > { %v853_v19 = vpop.f32.mrf.mxu0  ;;  %2543 = vmatpush3.bf16.xpose.msra.mxu0 %v1245_v15  ;;  %v905_v20 = vpop.f32.mrf.mxu1  ;;  %2549 = vmatpush3.bf16.xpose.msra.mxu1 %v1288_v17  ;;  %v1435_v15 = vsel %vm1425_vm2, %v3211_v3, -inf }
 0x1d7   : > { %2554 = vmatprep.subr.bf16.mxu0 %v2845_v0  ;;  %2560 = vmatprep.subr.bf16.mxu1 %v2845_v0 }
 0x1d8   : > { %v2485_v22 = vpop.f32.mrf.mxu0  ;;  %v2493_v23 = vpop.f32.mrf.mxu1 }
 0x1da   : > { %v954_v24 = vpop.f32.mrf.mxu0  ;;  %v1006_v26 = vpop.f32.mrf.mxu1 }
 0x1db   : > { %v1014_v25 = vpack.c.bf16 %v954_v24, %v954_v24  ;;  %v1015_v27 = vpack.c.bf16 %v1006_v26, %v1006_v26 }
 0x1dc   : > { %v2500_v28 = vpop.f32.mrf.mxu0  ;;  %v2508_v30 = vpop.f32.mrf.mxu1 }
 0x1dd   : > { %v1331_v29 = vsel %vm392_vm1, %v1014_v25, 0  ;;  %2545 = vmatmul.mubr.msk.bf16.vlgmr.msra.gmra.mxu0 %vm392_vm1, %v3077_v18  ;;  %v1374_v32 = vsel %vm392_vm1, %v1015_v27, 0  ;;  %2551 = vmatmul.mubr.msk.bf16.vlgmr.msra.gmra.mxu1 %vm392_vm1, %v3080_v21 }
 0x1de   : > { %v957_v33 = vpop.f32.mrf.mxu0  ;;  %2555 = vmatpush3.bf16.xpose.msra.mxu0 %v1331_v29  ;;  %v1009_v35 = vpop.f32.mrf.mxu1  ;;  %2561 = vmatpush3.bf16.xpose.msra.mxu1 %v1374_v32 }
 0x1df   : > { %2556 = vmatprep.mubr.msk.bf16.mxu0 %vm2846_vm0, %v2845_v0  ;;  %2562 = vmatprep.mubr.msk.bf16.mxu1 %vm2846_vm0, %v2845_v0 }
 0x1e0   : > { %v2501_v36 = vpop.f32.mrf.mxu0  ;;  %2566 = vmatprep.subr.bf16.mxu0 %v2845_v0  ;;  %v2509_v37 = vpop.f32.mrf.mxu1  ;;  %2572 = vmatprep.subr.bf16.mxu1 %v2845_v0 }
 0x1e2   : > { %v1078_v18 = vpop.f32.mrf.mxu0 }
 0x1e3   : > { %v1240_v21 = vpack.c.bf16 %v1078_v18, %v1078_v18 }
 0x1e4   : > { %v2516_v38 = vpop.f32.mrf.mxu0  ;;  %v1130_v41 = vpop.f32.mrf.mxu1 }
 0x1e5   : > { %2557 = vmatmul.mubr.msk.bf16.vlgmr.msra.gmra.mxu0 %vm392_vm1, %v3096_v31  ;;  %2563 = vmatmul.mubr.msk.bf16.vlgmr.msra.gmra.mxu1 %vm392_vm1, %v3101_v34  ;;  %v1523_v39 = vsel %vm1521_vm3, %v1240_v21, 0  ;;  %v1241_v42 = vpack.c.bf16 %v1130_v41, %v1130_v41 }
 0x1e6   : > { %2568 = vmatprep.mubr.msk.bf16.mxu0 %vm2846_vm0, %v2845_v0  ;;  %2574 = vmatprep.mubr.msk.bf16.mxu1 %vm2846_vm0, %v2845_v0  ;;  %v1081_v40 = vpop.f32.mrf.mxu0  ;;  %v2524_v34 = vpop.f32.mrf.mxu1 }
 0x1e7   : > { %2567 = vmatpush3.bf16.msra.mxu0 %v1523_v39  ;;  %v1569_v43 = vsel %vm1521_vm3, %v1241_v42, 0 }
 0x1e8   : > { %2578 = vmatprep.subr.bf16.mxu0 %v2845_v0  ;;  %v2517_v31 = vpop.f32.mrf.mxu0  ;;  %v1133_v44 = vpop.f32.mrf.mxu1  ;;  %2573 = vmatpush3.bf16.msra.mxu1 %v1569_v43 }
 0x1e9   : > { %2584 = vmatprep.subr.bf16.mxu1 %v2845_v0 }
 0x1ea   : > { %v3240_v45 = vpop.f32.mrf.mxu0  ;;  %v2525_v46 = vpop.f32.mrf.mxu1 }
 0x1eb   : > { %v1242_v58 = vpack.c.bf16 %v3240_v45, %v3240_v45 }
 0x1ec   : > { %v2532_v47 = vpop.f32.mrf.mxu0  ;;  %v3243_v49 = vpop.f32.mrf.mxu1 }
 0x1ee   : > { %v1185_v48 = vpop.f32.mrf.mxu0  ;;  %v2540_v51 = vpop.f32.mrf.mxu1 }
 0x1f0   : > { %v2533_v50 = vpop.f32.mrf.mxu0  ;;  %v1237_v52 = vpop.f32.mrf.mxu1 }
 0x1f2   : > { %v2541_v53 = vpop.f32.mrf.mxu1 }
 0x24d   : > { %v1428_v26 = vpop.xlane.xlu0 %1427  ;;  %v1431_v27 = vpop.xlane.xlu1 %1430 }
 0x29d   : > { %v1281_v59 = vpop.f32.mrf.mxu0  ;;  %v1324_v61 = vpop.f32.mrf.mxu1 }
 0x29e   : > { %v1421_v60 = vsel %vm1420_vm4, -3.4028235e+38, %v1281_v59  ;;  %v1422_v62 = vsel %vm1420_vm4, -3.4028235e+38, %v1324_v61 }
 0x29f   : > { %v2546_v63 = vpop.f32.mrf.mxu0  ;;  %v1438_v1 = vsel %vm1425_vm2, %v1421_v60, -inf  ;;  %v2552_v4 = vpop.f32.mrf.mxu1  ;;  %v1441_v5 = vsel %vm1425_vm2, %v1422_v62, -inf }
 0x2a0   : > { %1439 = vmax.xlane.f32.xlu0 %v1438_v1  ;;  %1442 = vmax.xlane.f32.xlu1 %v1441_v5 }
 0x2a1   : > { %v1284_v6 = vpop.f32.mrf.mxu0  ;;  %v1327_v7 = vpop.f32.mrf.mxu1 }
 0x2a2   : > { %v600_v6 = vld [vmem:[%s3277_s10] sm:$0xf] }
 0x2a3   : > { %v2547_v8 = vpop.f32.mrf.mxu0  ;;  %v2553_v10 = vpop.f32.mrf.mxu1 }
 0x2a4   : > { %1433 = vmax.xlane.f32.xlu0 %v1432_v9  ;;  %v601_v9 = vld [vmem:[%s3277_s10 + $0x4] sm:$0xf] }
 0x2a5   : > { %v1367_v11 = vpop.f32.mrf.mxu0  ;;  %v1410_v13 = vpop.f32.mrf.mxu1 }
 0x2a6   : > { %v1423_v12 = vsel %vm1420_vm4, -3.4028235e+38, %v1367_v11  ;;  %v1424_v17 = vsel %vm1420_vm4, -3.4028235e+38, %v1410_v13  ;;  %v1707_v11 = vsel %vm1521_vm3, %v600_v6, 0 }
 0x2a7   : > { %v2558_v14 = vpop.f32.mrf.mxu0  ;;  %v1444_v16 = vsel %vm1425_vm2, %v1423_v12, -inf  ;;  %v2564_v19 = vpop.f32.mrf.mxu1  ;;  %v1447_v24 = vsel %vm1425_vm2, %v1424_v17, -inf }
 0x2a8   : > { %1436 = vmax.xlane.f32.xlu0 %v1435_v15  ;;  %1445 = vmax.xlane.f32.xlu1 %v1444_v16  ;;  %v1753_v16 = vsel %vm1521_vm3, %v601_v9, 0  ;;  %v603_v19 = vld [vmem:[%s3277_s10 + $0xc] sm:$0xf]  ;;  %v2724_v9 = vld [vmem:[%s3415_s6 + $0x38] sm:$0xff]  }
 0x2a9   : > { %v1370_v20 = vpop.f32.mrf.mxu0  ;;  %v1413_v22 = vpop.f32.mrf.mxu1 }
 0x2ab   : > { %v2559_v23 = vpop.f32.mrf.mxu0  ;;  %v2565_v25 = vpop.f32.mrf.mxu1 }
 0x2ac   : > { %1448 = vmax.xlane.f32.xlu1 %v1447_v24  ;;  %v1845_v24 = vsel %vm1521_vm3, %v603_v19, 0  ;;  %v2725_v19 = vld [vmem:[%s3415_s6 + $0x30] sm:$0xff]  }
 0x329   : > { %v1440_v28 = vpop.xlane.xlu0 %1439  ;;  %v1443_v29 = vpop.xlane.xlu1 %1442 }
 0x32a   : > { %v1450_v30 = vmax.f32 %v1428_v26, %v1440_v28  ;;  %v1451_v32 = vmax.f32 %v1431_v27, %v1443_v29  ;;  %v2718_v27 = vld [vmem:[%s3415_s6 + $0x8] sm:$0xff]   ;;  %v2719_v28 = vld [vmem:[%s3415_s6] sm:$0xff]   ;;  %v2720_v29 = vld [vmem:[%s3415_s6 + $0x18] sm:$0xff]  }
 0x32c   : > { %v1454_v33 = vsub.f32 %v3201_v55, %v1450_v30  ;;  %v1466_v35 = vsub.f32 %v1421_v60, %v1450_v30  ;;  %v1455_v36 = vsub.f32 %v3203_v56, %v1451_v32  ;;  %v1467_v37 = vsub.f32 %v1422_v62, %v1451_v32  ;;  %v2721_v30 = vld [vmem:[%s3415_s6 + $0x10] sm:$0xff]  }
 0x32d   : > { %v1434_v40 = vpop.xlane.xlu0 %1433 }
 0x32e   : > { %v1458_v18 = vmul.f32 1.442695, %v1454_v33  ;;  %v1460_v21 = vmul.f32 1.442695, %v1455_v36  ;;  %v1472_v38 = vmul.f32 1.442695, %v1467_v37 }
 0x32f   : > { %v1470_v39 = vmul.f32 1.442695, %v1466_v35 }
 0x330   : > { %2726 = vpow2.f32 %v1458_v18 }
 0x331   : > { %2728 = vpow2.f32 %v1460_v21  ;;  %v1446_v41 = vpop.xlane.xlu1 %1445  ;;  %v1437_v43 = vpop.xlane.xlu0 %1436 }
 0x332   : > { %2730 = vpow2.f32 %v1472_v38  ;;  %v1452_v42 = vmax.f32 %v1434_v40, %v1446_v41 }
 0x333   : > { %2732 = vpow2.f32 %v1470_v39 }
 0x334   : > { %v1456_v31 = vsub.f32 %v3209_v2, %v1452_v42  ;;  %v1468_v34 = vsub.f32 %v1423_v12, %v1452_v42  ;;  %v1243_v2 = vpack.c.bf16 %v3243_v49, %v3243_v49  ;;  %v1615_v49 = vsel %vm1521_vm3, %v1242_v58, 0 }
 0x335   : > { %v1449_v55 = vpop.xlane.xlu1 %1448 }
 0x336   : > { %v1462_v44 = vmul.f32 1.442695, %v1456_v31  ;;  %v1474_v46 = vmul.f32 1.442695, %v1468_v34  ;;  %v1453_v56 = vmax.f32 %v1437_v43, %v1449_v55  ;;  %v1661_v62 = vsel %vm1521_vm3, %v1243_v2, 0 }
 0x338   : > { %2734 = vpow2.f32 %v1462_v44  ;;  %v1457_v47 = vsub.f32 %v3211_v3, %v1453_v56  ;;  %v1469_v48 = vsub.f32 %v1424_v17, %v1453_v56  ;;  %v602_v17 = vld [vmem:[%s3277_s10 + $0x8] sm:$0xf]  ;;  %s3371_s10 = scalar_lea.hbm %s3417_s8, %s2337_s21 }
 0x339   : > { %2736 = vpow2.f32 %v1474_v46  ;;  %v1799_v22 = vsel %vm1521_vm3, %v602_v17, 0 }
 0x33a   : > { %v1464_v50 = vmul.f32 1.442695, %v1457_v47  ;;  %v1476_v51 = vmul.f32 1.442695, %v1469_v48 }
 0x33c   : > { %2738 = vpow2.f32 %v1464_v50 }
 0x33d   : > { %v2727_v52 = vpop.eup %2726  ;;  %2740 = vpow2.f32 %v1476_v51 }
 0x33e   : > { %v2729_v53 = vpop.eup %2728  ;;  %v1478_v54 = vsel %vm1425_vm2, %v2727_v52, 0.0  ;;  %v1510_v20 = vpack.c.bf16 %v2727_v52, %v2727_v52 }
 0x33f   : > { %v2731_v57 = vpop.eup %2730  ;;  %1479 = vadd.xlane.f32.xlu0 %v1478_v54  ;;  %v1481_v63 = vsel %vm1425_vm2, %v2729_v53, 0.0  ;;  %v1511_v23 = vpack.c.bf16 %v2729_v53, %v2729_v53 }
 0x340   : > { %v2733_v3 = vpop.eup %2732  ;;  %v1515_v59 = vpack.c.bf16 %v2731_v57, %v2731_v57  ;;  %v1497_v1 = vsel %vm1425_vm2, %v2731_v57, 0.0 }
 0x341   : > { %v1494_v60 = vsel %vm1425_vm2, %v2733_v3, 0.0  ;;  %v1514_v61 = vpack.c.bf16 %v2733_v3, %v2733_v3 }
 0x342   : > { %1495 = vadd.xlane.f32.xlu1 %v1494_v60  ;;  %2575 = vmatmul.mubr.msk.bf16.vlgmr.msra.gmra.mxu1 %vm1425_vm2, %v1515_v59 }
 0x343   : > { %2569 = vmatmul.mubr.msk.bf16.vlgmr.msra.gmra.mxu0 %vm1425_vm2, %v1514_v61  ;;  %2585 = vmatpush3.bf16.msra.mxu1 %v1661_v62 }
 0x344   : > { %2579 = vmatpush3.bf16.msra.mxu0 %v1615_v49  ;;  %1482 = vadd.xlane.f32.xlu0 %v1481_v63 }
 0x345   : > { %v2735_v45 = vpop.eup %2734  ;;  %2580 = vmatprep.mubr.msk.bf16.mxu0 %vm2846_vm0, %v2845_v0  ;;  %2590 = vmatprep.subr.bf16.mxu0 %v2845_v0 }
 0x346   : > { %v2737_v4 = vpop.eup %2736  ;;  %1498 = vadd.xlane.f32.xlu1 %v1497_v1  ;;  %v1484_v5 = vsel %vm1425_vm2, %v2735_v45, 0.0  ;;  %2586 = vmatprep.mubr.msk.bf16.mxu1 %vm2846_vm0, %v2845_v0  ;;  %v1512_v25 = vpack.c.bf16 %v2735_v45, %v2735_v45 }
 0x347   : > { %v1500_v7 = vsel %vm1425_vm2, %v2737_v4, 0.0  ;;  %v1516_v8 = vpack.c.bf16 %v2737_v4, %v2737_v4  ;;  %2596 = vmatprep.subr.bf16.mxu1 %v2845_v0  ;;  %v2722_v4 = vld [vmem:[%s3415_s6 + $0x28] sm:$0xff]  }
 0x348   : > { %1485 = vadd.xlane.f32.xlu0 %v1484_v5 }
 0x349   : > { %v2739_v10 = vpop.eup %2738 }
 0x34a   : > { %v2741_v12 = vpop.eup %2740  ;;  %1501 = vadd.xlane.f32.xlu1 %v1500_v7  ;;  %v1487_v13 = vsel %vm1425_vm2, %v2739_v10, 0.0  ;;  %v1513_v26 = vpack.c.bf16 %v2739_v10, %v2739_v10 }
 0x34b   : > { %2581 = vmatmul.mubr.msk.bf16.vlgmr.msra.gmra.mxu0 %vm1425_vm2, %v1516_v8  ;;  %v1503_v14 = vsel %vm1425_vm2, %v2741_v12, 0.0  ;;  %v1517_v15 = vpack.c.bf16 %v2741_v12, %v2741_v12 }
 0x34c   : > { %2591 = vmatpush3.bf16.msra.mxu0 %v1707_v11  ;;  %1488 = vadd.xlane.f32.xlu0 %v1487_v13  ;;  %v2723_v13 = vld [vmem:[%s3415_s6 + $0x20] sm:$0xff]  }
 0x34d   : > { %2587 = vmatmul.mubr.msk.bf16.vlgmr.msra.gmra.mxu1 %vm1425_vm2, %v1517_v15  ;;  %2592 = vmatprep.mubr.msk.bf16.mxu0 %vm2846_vm0, %v2845_v0 }
 0x34e   : > { %1504 = vadd.xlane.f32.xlu1 %v1503_v14  ;;  %2597 = vmatpush3.bf16.msra.mxu1 %v1753_v16 }
 0x34f   : > { %2602 = vmatprep.subr.bf16.mxu0 %v2845_v0  ;;  %2598 = vmatprep.mubr.msk.bf16.mxu1 %vm2846_vm0, %v2845_v0 }
 0x350   : > { %2608 = vmatprep.subr.bf16.mxu1 %v2845_v0 }
 0x353   : > { %2593 = vmatmul.mubr.msk.bf16.vlgmr.msra.gmra.mxu0 %vm1425_vm2, %v1510_v20 }
 0x354   : > { %2603 = vmatpush3.bf16.msra.mxu0 %v1799_v22  ;;  %2604 = vmatprep.mubr.msk.bf16.mxu0 %vm2846_vm0, %v2845_v0 }
 0x355   : > { %2599 = vmatmul.mubr.msk.bf16.vlgmr.msra.gmra.mxu1 %vm1425_vm2, %v1511_v23  ;;  %2614 = vmatprep.subr.bf16.mxu0 %v2845_v0 }
 0x356   : > { %2609 = vmatpush3.bf16.msra.mxu1 %v1845_v24  ;;  %2610 = vmatprep.mubr.msk.bf16.mxu1 %vm2846_vm0, %v2845_v0 }
 0x357   : > { %2622 = vmatprep.subr.bf16.mxu1 %v2845_v0 }
 0x35b   : > { %2605 = vmatmul.mubr.msk.bf16.vlgmr.msra.gmra.mxu0 %vm1425_vm2, %v1512_v25 }
 0x35c   : > { %2618 = vmatprep.mubr.msk.bf16.mxu0 %vm2846_vm0, %v2845_v0  ;;  %2615 = vmatpush3.bf16.msra.mxu0 %v2718_v27 }
 0x35d   : > { %2611 = vmatmul.mubr.msk.bf16.vlgmr.msra.gmra.mxu1 %vm1425_vm2, %v1513_v26  ;;  %2616 = vmatprep.subr.bf16.mxu0 %v2845_v0 }
 0x35e   : > { %2626 = vmatprep.mubr.msk.bf16.mxu1 %vm2846_vm0, %v2845_v0  ;;  %2623 = vmatpush3.bf16.msra.mxu1 %v2720_v29 }
 0x35f   : > { %2624 = vmatprep.subr.bf16.mxu1 %v2845_v0 }
 0x360   : > { %2617 = vmatpush3.bf16.msra.mxu0 %v2719_v28 }
 0x361   : > { %2630 = vmatprep.subr.bf16.mxu0 %v2845_v0 }
 0x362   : > { %2625 = vmatpush3.bf16.msra.mxu1 %v2721_v30 }
 0x363   : > { %2638 = vmatprep.subr.bf16.mxu1 %v2845_v0 }
 0x3c8   : > { %v1480_v32 = vpop.xlane.xlu0 %1479 }
 0x3cb   : > { %v1496_v33 = vpop.xlane.xlu1 %1495 }
 0x3cc   : > { %v1506_v21 = vadd.f32 %v1496_v33, %v1480_v32 }
 0x3cd   : > { %v1483_v35 = vpop.xlane.xlu0 %1482 }
 0x3ce   : > { %2742 = vrcp.f32 %v1506_v21 }
 0x3cf   : > { %v1499_v36 = vpop.xlane.xlu1 %1498 }
 0x3d0   : > { %v1507_v42 = vadd.f32 %v1499_v36, %v1483_v35 }
 0x3d1   : > { %v1486_v38 = vpop.xlane.xlu0 %1485 }
 0x3d2   : > { %2744 = vrcp.f32 %v1507_v42 }
 0x3d3   : > { %v1502_v40 = vpop.xlane.xlu1 %1501 }
 0x3d4   : > { %v1508_v47 = vadd.f32 %v1502_v40, %v1486_v38 }
 0x3d5   : > { %v1489_v44 = vpop.xlane.xlu0 %1488 }
 0x3d6   : > { %2746 = vrcp.f32 %v1508_v47 }
 0x3d7   : > { %v1505_v46 = vpop.xlane.xlu1 %1504 }
 0x3d8   : > { %v1509_v51 = vadd.f32 %v1505_v46, %v1489_v44  ;;  %v2335_v46 = vld [vmem:[%s3416_s7] ss:$0 sm:$0xff] }
 0x3da   : > { %2748 = vrcp.f32 %v1509_v51 }
 0x3db   : > { %v2743_v59 = vpop.eup %2742 }
 0x3df   : > { %v2745_v63 = vpop.eup %2744 }
 0x3e3   : > { %v2747_v15 = vpop.eup %2746 }
 0x3e7   : > { %v2749_v23 = vpop.eup %2748 }
 0x402   : > { %v1605_v37 = vpop.f32.mrf.mxu1 }
 0x403   : > { %v1559_v18 = vpop.f32.mrf.mxu0 }
 0x404   : > { %v2576_v39 = vpop.f32.mrf.mxu1 }
 0x405   : > { %v2570_v41 = vpop.f32.mrf.mxu0 }
 0x406   : > { %v1608_v31 = vpop.f32.mrf.mxu1 }
 0x407   : > { %v1562_v34 = vpop.f32.mrf.mxu0 }
 0x408   : > { %v2577_v43 = vpop.f32.mrf.mxu1 }
 0x409   : > { %v2571_v55 = vpop.f32.mrf.mxu0 }
 0x40b   : > { %v1651_v56 = vpop.f32.mrf.mxu0 }
 0x40d   : > { %v2582_v48 = vpop.f32.mrf.mxu0  ;;  %v1697_v50 = vpop.f32.mrf.mxu1 }
 0x40f   : > { %v1654_v52 = vpop.f32.mrf.mxu0  ;;  %v2588_v53 = vpop.f32.mrf.mxu1 }
 0x411   : > { %v2583_v2 = vpop.f32.mrf.mxu0  ;;  %v1700_v54 = vpop.f32.mrf.mxu1 }
 0x413   : > { %v1743_v57 = vpop.f32.mrf.mxu0  ;;  %v2589_v58 = vpop.f32.mrf.mxu1 }
 0x414   : > { %v1744_v3 = vadd.f32 %v1743_v57, %v1559_v18 }
 0x415   : > { %v2594_v60 = vpop.f32.mrf.mxu0  ;;  %v1789_v61 = vpop.f32.mrf.mxu1 }
 0x416   : > { %v1891_v62 = vmul.f32 %v2743_v59, %v1744_v3  ;;  %v1790_v49 = vadd.f32 %v1789_v61, %v1605_v37 }
 0x417   : > { %v1746_v45 = vpop.f32.mrf.mxu0  ;;  %v2600_v1 = vpop.f32.mrf.mxu1 }
 0x418   : > { %v1895_v5 = vpack.c.bf16 %v1891_v62, %v1891_v62  ;;  %v1892_v6 = vmul.f32 %v2745_v63, %v1790_v49 }
 0x419   : > { %v2595_v7 = vpop.f32.mrf.mxu0  ;;  %v1792_v8 = vpop.f32.mrf.mxu1 }
 0x41a   : > { %v1896_v10 = vpack.c.bf16 %v1892_v6, %v1892_v6  ;;  %2619 = vmatmul.mubr.msk.bf16.vlgmr.msra.gmra.mxu0 %vm392_vm1, %v1895_v5 }
 0x41b   : > { %v1835_v11 = vpop.f32.mrf.mxu0  ;;  %2631 = vmatpush3.bf16.msra.mxu0 %v2722_v4  ;;  %v2601_v12 = vpop.f32.mrf.mxu1  ;;  %2634 = vmatprep.mubr.msk.bf16.mxu0 %vm2846_vm0, %v2845_v0 }
 0x41c   : > { %v1836_v14 = vadd.f32 %v1835_v11, %v1651_v56  ;;  %2627 = vmatmul.mubr.msk.bf16.vlgmr.msra.gmra.mxu1 %vm392_vm1, %v1896_v10  ;;  %2632 = vmatprep.subr.bf16.mxu0 %v2845_v0 }
 0x41d   : > { %v2606_v16 = vpop.f32.mrf.mxu0  ;;  %v1881_v17 = vpop.f32.mrf.mxu1  ;;  %2639 = vmatpush3.bf16.msra.mxu1 %v2724_v9  ;;  %2642 = vmatprep.mubr.msk.bf16.mxu1 %vm2846_vm0, %v2845_v0 }
 0x41e   : > { %v1893_v20 = vmul.f32 %v2747_v15, %v1836_v14  ;;  %v1882_v22 = vadd.f32 %v1881_v17, %v1697_v50  ;;  %2640 = vmatprep.subr.bf16.mxu1 %v2845_v0 }
 0x41f   : > { %v1838_v24 = vpop.f32.mrf.mxu0  ;;  %2633 = vmatpush3.bf16.msra.mxu0 %v2723_v13  ;;  %v2612_v25 = vpop.f32.mrf.mxu1 }
 0x420   : > { %v1897_v26 = vpack.c.bf16 %v1893_v20, %v1893_v20  ;;  %v1894_v27 = vmul.f32 %v2749_v23, %v1882_v22 }
 0x421   : > { %v2607_v28 = vpop.f32.mrf.mxu0  ;;  %v1884_v29 = vpop.f32.mrf.mxu1  ;;  %2641 = vmatpush3.bf16.msra.mxu1 %v2725_v19 }
 0x422   : > { %v1898_v30 = vpack.c.bf16 %v1894_v27, %v1894_v27  ;;  %2635 = vmatmul.mubr.msk.bf16.vlgmr.msra.gmra.mxu0 %vm392_vm1, %v1897_v26 }
 0x423   : > { %v2613_v32 = vpop.f32.mrf.mxu1 }
 0x424   : > { %2643 = vmatmul.mubr.msk.bf16.vlgmr.msra.gmra.mxu1 %vm392_vm1, %v1898_v30 }
 0x4da   : > { %v1964_v33 = vpop.f32.mrf.mxu0 }
 0x4db   : > { %v2135_v39 = vsel %vm392_vm1, %v1964_v33, 0.0 }
 0x4dc   : > { %v2620_v35 = vpop.f32.mrf.mxu0  ;;  %v2019_v36 = vpop.f32.mrf.mxu1 }
 0x4dd   : > { %v2136_v18 = vsel %vm392_vm1, %v2019_v36, 0.0 }
 0x4de   : > { %v1967_v0 = vpop.f32.mrf.mxu0  ;;  %v2628_v37 = vpop.f32.mrf.mxu1  ;;  %v2137_v40 = vadd.f32 %v2136_v18, %v2135_v39 }
 0x4e0   : > { %v2621_v21 = vpop.f32.mrf.mxu0  ;;  %v2022_v38 = vpop.f32.mrf.mxu1 }
 0x4e2   : > { %v2074_v41 = vpop.f32.mrf.mxu0  ;;  %v2629_v42 = vpop.f32.mrf.mxu1 }
 0x4e3   : > { %v2138_v31 = vsel %vm392_vm1, %v2074_v41, 0.0 }
 0x4e4   : > { %v2139_v34 = vadd.f32 %v2138_v31, %v2137_v40  ;;  %v2636_v43 = vpop.f32.mrf.mxu0  ;;  %v2129_v55 = vpop.f32.mrf.mxu1 }
 0x4e5   : > { %v2140_v44 = vsel %vm392_vm1, %v2129_v55, 0.0 }
 0x4e6   : > { %v2077_v56 = vpop.f32.mrf.mxu0  ;;  %v2141_v47 = vadd.f32 %v2140_v44, %v2139_v34  ;;  %v2644_v48 = vpop.f32.mrf.mxu1 }
 0x4e8   : > { %v2149_v50 = vadd.f32 %v2335_v46, %v2141_v47  ;;  %v2637_v51 = vpop.f32.mrf.mxu0  ;;  %v2132_v52 = vpop.f32.mrf.mxu1 }
 0x4ea   : > { %v2645_v53 = vpop.f32.mrf.mxu1  ;;  %2150 = vst.msk [vmem:[%s350_s26] sm:$0xff] %vm392_vm1, %v2149_v50 }
 0x4eb   : > { %2791 = shalt.err (!%p2788_p2)
}
 0x4ec   : > { %s2792_s23 = scalar_lea.hbm %s3371_s10, 128  ;;  %s2796_s20 = scalar_lea.hbm %s3417_s8, 256 }
 0x4ed   : > { %p2793_p4 = scmp.ne.s32.totalorder %s3371_s10, %s2792_s23  ;;  %p2797_p0 = scmp.lt.s32.totalorder %s3371_s10, %s3417_s8 }
 0x4ee   : > { %p2798_p6 = scmp.lt.s32.totalorder %s2796_s20, %s2792_s23 }
 0x4ef   : > { %p2794_p9 = pnand %p2793_p4, %p3429_p13 }
 0x4f0   : > { %p2799_p11 = por %p2798_p6, %p2797_p0 }
 0x4f1   : > { %p2795_p7 = pneg %p2794_p9 }
 0x4f3   : > { %p2800_p12 = pnand %p2799_p11, %p2795_p7 }
 0x4f5   : > { %2803 = shalt.err (!%p2800_p12)
}
 0x4f6   : > { %2648 = dma.vmem_to_hbm [thread:$0]  (%p3429_p13), %s2166_s16, 128, %s3371_s10, %s2152_s9  }
 0x4f7 PF: > { %s2177_s12 = sand.u32 1, %s2830_s27   ;;  %p3430_p1 = scmp.ne.s32.totalorder %s3424_s18, 0 }
 0x4f8   : > { %p3431_p3 = scmp.ge.s32.totalorder %s2842_s30, 2  ;;  %s2178_s15 = scalar_lea.sflag [#allocation4], %s2177_s12 }
 0x4fa   : > { %p2655_p5 = pnand %p3431_p3, %p3430_p1 }
 0x4fc   : > { %p2656_p8 = pneg %p2655_p5 }
 0x4fe   : > { %2825 = dma.done.wait (%p2656_p8), %s2178_s15, 128  }
 0x4ff   : > { %2827 = vsyncadd (%p2656_p8), %s2178_s15, 4294967168  ;;  %s3432_s24 = sld [smem:[#allocation8_spill]]  ;;  %p21_p10 = scmp.ge.s32.totalorder %s2918_s11, 4  }
 0x500   : > { %s3433_s27 = smov %s2834_s28  ;;  %s3434_s28 = smov %s2838_s29 }
 0x501   : > { %s3436_s30 = smov %s2918_s11  ;;  %23 = sbr.rel (!%p21_p10) target bundleno = 5 (0x5), region = 103 }
 0x505   : > { %s3435_s29 = smov %s3432_s24 }
 0x506   :  { %2183 = vsyncpa [#allocation3], 1 }
 0x507   :  { %2185 = vsyncpa [#allocation3 + $0x1], 1 }
 0x508   :  { %2186 = vsyncpa [#allocation4], 1 }
 0x509   :  { %2188 = vsyncpa [#allocation4 + $0x1], 1 }

</bundles_post_ra>
